<compile_context>
chip_gen: v6e
topology: v6e:2x2x1
jax: 0.10.0
libtpu: 0.0.40
codegen_flags: <defaults>
</compile_context>

<pallas_src>
import functools

import jax
import jax.numpy as jnp
from jax.experimental import pallas as pl
from jax.experimental.pallas import tpu as pltpu


def _gelu_exact(x):
    # nn.GELU() default (approximate='none') -> erf-based GELU, computed in f32.
    return 0.5 * x * (1.0 + jax.lax.erf(x * 0.7071067811865476))


def _device_vmem_budget_and_cores():
    """Per-generation scoped-VMEM budget (bytes) and TensorCores per chip."""
    kind = ""
    try:
        kind = jax.devices()[0].device_kind.lower()
    except Exception:
        pass
    if "v7" in kind:
        return 44 << 20, 2          # 64 MiB physical -> stay well under; 2 TCs/chip
    if "v6" in kind or "v5" in kind:
        return 100 << 20, 1         # 128 MiB physical; default scoped 16-32 MiB is wasteful
    return 64 << 20, 1              # conservative default for unknown chips


def _choose_block_b(batch, n, e, h, o, c_itemsize, vmem_budget_bytes, num_cores=1):
    """Pick how many documents to pack per grid step.

    Counts double-buffered input/output blocks AND the live f32 intermediates
    (gate/x, GC1 pre-activation, h1, reduction rows). Picks the largest legal
    block that fits; on multi-core chips prefers a block that leaves >= num_cores
    grid steps so `dimension_semantics=("parallel",)` can use every core.
    """
    f32 = 4
    per_doc = (
        2 * (n * e * c_itemsize + n * n * c_itemsize + n * f32)   # dbl-buffered wemb/adj/mask
        + 2 * o * f32                                             # dbl-buffered pooled output
        + 2 * n * e * f32                                         # gate + gated x (f32)
        + 2 * n * h * f32                                         # GC1 pre-act + h1 (f32)
        + (n + h + o) * f32                                       # colsum / r / pooled rows
    )
    fixed = 2 * (2 * e * f32                                      # sigmoid gate table (f32)
                 + e * h * c_itemsize                             # W1
                 + h * f32 + h * o * f32 + o * f32)               # b1, W2, b2 (f32)
    usable = max(vmem_budget_bytes - fixed, per_doc)
    max_docs = max(1, usable // per_doc)

    def legal(cand):
        # (block_b, N) f32 mask / (block_b, O) f32 output blocks: second-to-last
        # dim must be a multiple of the 8-sublane tile or the full array extent.
        return batch % cand == 0 and (cand % 8 == 0 or cand == batch)

    cands = [c for c in range(1, batch + 1) if legal(c)]
    fitting = [c for c in cands if c <= max_docs]
    if fitting:
        if num_cores >= 2:
            multi = [c for c in fitting if batch // c >= num_cores]
            if multi:
                return max(multi)
        return max(fitting)
    # Nothing fits the model: smallest tiling-legal block (vmem_limit_bytes is
    # set explicitly, so the compiler still gets the full scoped budget).
    return min(cands)


def textgcn_kernel(mask_ref, wemb_ref, adj_ref, gates_ref,
                   w1_ref, b1_ref, w2_ref, b2_ref, pooled_ref, *,
                   gelu_approx=False):
    bt, n, e = wemb_ref.shape
    h = w1_ref.shape[1]
    cdtype = wemb_ref.dtype

    adj = adj_ref[...]                                   # (Bt, N, N) compute dtype
    mask = mask_ref[...]                                 # (Bt, N)    0/1, f32
    gates = gates_ref[...]                               # (2, E)     sigmoid(mask_embedding), f32

    # gate[b, i, :] = sigmoid(mask_emb[i_mask[b, i]]) via a linear 0/1 mix —
    # no (B, N, E) m_emb stream in HBM; mix kept in f32 (VPU friendly on v5e).
    g0 = gates[0:1, :][None]                             # (1, 1, E)
    g1 = gates[1:2, :][None]                             # (1, 1, E)
    gate = g0 + mask[:, :, None] * (g1 - g0)             # (Bt, N, E) f32
    x = (wemb_ref[...] * gate).astype(cdtype)            # cast only for the matmuls

    # GraphConvolution 1: adj @ (x @ W1) + b1 == (adj @ x) @ W1 + b1.
    # Run the badly-shaped batched adjacency matmul over the narrower width.
    # TODO(synk): for very small N a VPU broadcast-mul + sublane-reduce path
    # would avoid the <10%-occupancy MXU matmul; kept on MXU for generality.
    if e <= h:
        ax = jnp.einsum("bnm,bme->bne", adj, x,
                        preferred_element_type=jnp.float32)          # (Bt, N, E) f32
        pre = jnp.dot(ax.reshape(bt * n, e).astype(cdtype), w1_ref[...],
                      preferred_element_type=jnp.float32).reshape(bt, n, h)
    else:
        s1 = jnp.dot(x.reshape(bt * n, e), w1_ref[...],
                     preferred_element_type=jnp.float32)              # (Bt*N, H) f32
        s1 = s1.reshape(bt, n, h).astype(cdtype)
        pre = jnp.einsum("bnm,bmh->bnh", adj, s1,
                         preferred_element_type=jnp.float32)          # (Bt, N, H) f32
    pre = pre + b1_ref[...]
    if gelu_approx:
        h1 = jax.nn.gelu(pre, approximate=True)          # tanh -> EUP slot
    else:
        h1 = _gelu_exact(pre)                            # erf, matches nn.GELU()

    # GraphConvolution 2 + node pooling, fully collapsed:
    #   pooled = sum_n(adj @ (h1 @ W2) + b2) = (colsum(adj) @ h1) @ W2 + N*b2
    # -> node reduction first (VPU broadcast-mul + reduce), W2 matmul on (Bt,H).
    colsum = jnp.sum(adj, axis=1, dtype=jnp.float32)     # (Bt, N) f32 accumulate, no adj copy
    r = jnp.sum(colsum[:, :, None] * h1, axis=1)         # (Bt, H) f32
    pooled = jnp.dot(r, w2_ref[...],
                     preferred_element_type=jnp.float32) # W2 kept f32 (tiny)
    pooled_ref[...] = pooled + float(n) * b2_ref[...]    # bias picks up factor N


def textgcn_forward(params, words2ids, i_mask, paris_mat, *,
                    compute_dtype=jnp.float32, block_b=None, gelu_approx=False):
    cdtype = jnp.dtype(compute_dtype)

    # Embedding gather in f32 (no full-vocab table re-cast per call); only the
    # gathered (B, N, E) stream is cast to the compute dtype.
    # TODO(synk): for large vocab / N, move the gather in-kernel (scalar-prefetch
    # ids + DMA from a pl.ANY table ref) to kill the (B,N,E) HBM round trip.
    w_emb = params["w_embedding"][words2ids].astype(cdtype)          # (B, N, E)
    gates = jax.nn.sigmoid(params["mask_embedding"]).astype(jnp.float32)  # (2, E)
    mask = i_mask.astype(jnp.float32)                                # (B, N) 0/1
    adj = paris_mat.astype(cdtype)                                   # (B, N, N)

    B, N, E = w_emb.shape
    H = params["gc1_w"].shape[1]
    O = params["gc2_w"].shape[1]

    vmem_budget, num_cores = _device_vmem_budget_and_cores()
    if block_b is None:
        block_b = _choose_block_b(B, N, E, H, O, cdtype.itemsize,
                                  int(vmem_budget * 0.85), num_cores=num_cores)
    assert B % block_b == 0, (B, block_b)

    w1 = params["gc1_w"].astype(cdtype)
    w2 = params["gc2_w"].astype(jnp.float32)   # used once on (Bt,H) — keep f32
    b1 = params["gc1_b"].astype(jnp.float32)
    b2 = params["gc2_b"].astype(jnp.float32)

    pooled = pl.pallas_call(
        functools.partial(textgcn_kernel, gelu_approx=gelu_approx),
        out_shape=jax.ShapeDtypeStruct((B, O), jnp.float32),
        grid_spec=pltpu.PrefetchScalarGridSpec(
            num_scalar_prefetch=0,
            grid=(B // block_b,),
            in_specs=[
                pl.BlockSpec((block_b, N), lambda b: (b, 0)),
                pl.BlockSpec((block_b, N, E), lambda b: (b, 0, 0)),
                pl.BlockSpec((block_b, N, N), lambda b: (b, 0, 0)),
                pl.BlockSpec((2, E), lambda b: (0, 0)),
                pl.BlockSpec((E, H), lambda b: (0, 0)),
                pl.BlockSpec((1, H), lambda b: (0, 0)),
                pl.BlockSpec((H, O), lambda b: (0, 0)),
                pl.BlockSpec((1, O), lambda b: (0, 0)),
            ],
            out_specs=pl.BlockSpec((block_b, O), lambda b: (b, 0)),
        ),
        compiler_params=pltpu.CompilerParams(
            dimension_semantics=("parallel",),
            vmem_limit_bytes=int(vmem_budget)),
    )(mask, w_emb, adj, gates, w1, b1, w2, b2)

    # Tiny classification head (single=True): C is lane-sparse (8 lanes), so it
    # is cheaper as a plain-XLA epilogue on the lane-denser pooled features.
    logits = pooled @ params["pred_w"] + params["pred_b"]
    return jax.nn.log_softmax(logits, axis=-1)           # (B, C)


def textgcn_reference(params, words2ids, i_mask, paris_mat):
    w_emb = params["w_embedding"][words2ids]
    m_emb = params["mask_embedding"][i_mask]
    x = w_emb * jax.nn.sigmoid(m_emb)
    h1 = jnp.einsum("bnm,bme->bne", paris_mat, x @ params["gc1_w"]) + params["gc1_b"]
    h1 = _gelu_exact(h1)
    h2 = jnp.einsum("bnm,bme->bne", paris_mat, h1 @ params["gc2_w"]) + params["gc2_b"]
    logits = h2.sum(axis=1) @ params["pred_w"] + params["pred_b"]
    return jax.nn.log_softmax(logits, axis=1)


def init_params(key, num_words, embedding_dim, nhid_dim, ohid_dim, class_size):
    ks = jax.random.split(key, 9)
    return {
        "w_embedding": jax.random.normal(ks[0], (num_words, embedding_dim), jnp.float32) * 0.1,
        "mask_embedding": jax.random.normal(ks[1], (2, embedding_dim), jnp.float32) * 0.1,
        "gc1_w": jax.random.normal(ks[2], (embedding_dim, nhid_dim), jnp.float32) * 0.1,
        "gc1_b": jax.random.normal(ks[3], (1, nhid_dim), jnp.float32) * 0.1,
        "gc2_w": jax.random.normal(ks[4], (nhid_dim, ohid_dim), jnp.float32) * 0.1,
        "gc2_b": jax.random.normal(ks[5], (1, ohid_dim), jnp.float32) * 0.1,
        "pred_w": jax.random.normal(ks[6], (ohid_dim, class_size), jnp.float32) * 0.1,
        "pred_b": jax.random.normal(ks[7], (1, class_size), jnp.float32) * 0.1,
    }


if __name__ == "__main__":
    # TODO(synk): only the `single=True` head is implemented; MatchSimpleNet
    # (multi-label head) was not provided in the reference source.
    B, N = 2, 16                    # batch, number of word-nodes per document
    num_words, E = 100, 32          # vocab, embedding_dim
    H, O, C = 32, 32, 8             # nhid_dim, ohid_dim, class_size

    key = jax.random.PRNGKey(0)
    k_par, k_ids, k_mask, k_adj = jax.random.split(key, 4)

    params = init_params(k_par, num_words, E, H, O, C)
    words2ids = jax.random.randint(k_ids, (B, N), 0, num_words, dtype=jnp.int32)
    i_mask = jax.random.randint(k_mask, (B, N), 0, 2, dtype=jnp.int32)
    paris_mat = jax.nn.softmax(
        jax.random.normal(k_adj, (B, N, N), jnp.float32), axis=-1)   # row-normalized adjacency

    ref = textgcn_reference(params, words2ids, i_mask, paris_mat)

    # f32 compute path. Tolerance covers fp reassociation from the GC2+pool
    # collapse under TPU default matmul precision.
    out_f32 = jax.block_until_ready(
        textgcn_forward(params, words2ids, i_mask, paris_mat,
                        compute_dtype=jnp.float32))
    assert out_f32.shape == (B, C)
    assert jnp.allclose(out_f32, ref, atol=5e-3, rtol=1e-3), (out_f32, ref)

    # f32 + tanh-approx GELU (EUP path); small numerics delta expected.
    out_tanh = jax.block_until_ready(
        textgcn_forward(params, words2ids, i_mask, paris_mat,
                        compute_dtype=jnp.float32, gelu_approx=True))
    assert out_tanh.shape == (B, C)
    assert jnp.allclose(out_tanh, ref, atol=2e-2, rtol=1e-2), (out_tanh, ref)

    # bf16 compute path (MXU throughput / HBM-byte savings); gating + GC2
    # reduction stay f32, accumulation stays f32, tolerance loosened.
    out_bf16 = jax.block_until_ready(
        textgcn_forward(params, words2ids, i_mask, paris_mat,
                        compute_dtype=jnp.bfloat16))
    assert out_bf16.shape == (B, C)
    assert jnp.allclose(out_bf16, ref, atol=2e-1, rtol=5e-2), (out_bf16, ref)

    print("KERNEL_OK")
</pallas_src>

<mosaic_0001>
module attributes {stable_mosaic.version = 11 : i64} {
  func.func @textgcn_kernel(%arg0: i32, %arg1: memref<2x16xf32, #tpu.memory_space<vmem>>, %arg2: memref<2x16x32xf32, #tpu.memory_space<vmem>>, %arg3: memref<2x16x16xf32, #tpu.memory_space<vmem>>, %arg4: memref<2x32xf32, #tpu.memory_space<vmem>>, %arg5: memref<32x32xf32, #tpu.memory_space<vmem>>, %arg6: memref<1x32xf32, #tpu.memory_space<vmem>>, %arg7: memref<32x32xf32, #tpu.memory_space<vmem>>, %arg8: memref<1x32xf32, #tpu.memory_space<vmem>>, %arg9: memref<2x32xf32, #tpu.memory_space<vmem>>) attributes {dimension_semantics = [#tpu.dimension_semantics<parallel>], iteration_bounds = array<i64: 1>, scalar_prefetch = 0 : i64, scratch_operands = 0 : i64, tpu.core_type = #tpu.core_type<tc>, window_params = [{transform_indices = @transform_0, window_bounds = array<i64: 2, 16>}, {transform_indices = @transform_1, window_bounds = array<i64: 2, 16, 32>}, {transform_indices = @transform_2, window_bounds = array<i64: 2, 16, 16>}, {pipeline_mode = #tpu.pipeline_mode<synchronous>, transform_indices = @transform_3, window_bounds = array<i64: 2, 32>}, {pipeline_mode = #tpu.pipeline_mode<synchronous>, transform_indices = @transform_4, window_bounds = array<i64: 32, 32>}, {pipeline_mode = #tpu.pipeline_mode<synchronous>, transform_indices = @transform_5, window_bounds = array<i64: 1, 32>}, {pipeline_mode = #tpu.pipeline_mode<synchronous>, transform_indices = @transform_6, window_bounds = array<i64: 32, 32>}, {pipeline_mode = #tpu.pipeline_mode<synchronous>, transform_indices = @transform_7, window_bounds = array<i64: 1, 32>}, {transform_indices = @transform_8, window_bounds = array<i64: 2, 32>}]} {
    %c0 = arith.constant 0 : index
    %c0_0 = arith.constant 0 : index
    %c0_1 = arith.constant 0 : index
    %0 = vector.load %arg3[%c0, %c0_0, %c0_1] : memref<2x16x16xf32, #tpu.memory_space<vmem>>, vector<2x16x16xf32>
    %c0_2 = arith.constant 0 : index
    %c0_3 = arith.constant 0 : index
    %1 = vector.load %arg1[%c0_2, %c0_3] : memref<2x16xf32, #tpu.memory_space<vmem>>, vector<2x16xf32>
    %c0_4 = arith.constant 0 : index
    %c0_5 = arith.constant 0 : index
    %2 = vector.load %arg4[%c0_4, %c0_5] : memref<2x32xf32, #tpu.memory_space<vmem>>, vector<2x32xf32>
    %3 = vector.extract_strided_slice %2 {offsets = [0, 0], sizes = [1, 32], strides = [1, 1]} : vector<2x32xf32> to vector<1x32xf32>
    %4 = vector.shape_cast %3 : vector<1x32xf32> to vector<1x1x32xf32>
    %5 = vector.extract_strided_slice %2 {offsets = [1, 0], sizes = [1, 32], strides = [1, 1]} : vector<2x32xf32> to vector<1x32xf32>
    %6 = vector.shape_cast %5 : vector<1x32xf32> to vector<1x1x32xf32>
    %7 = vector.shape_cast %1 : vector<2x16xf32> to vector<2x16x1xf32>
    %8 = arith.subf %6, %4 : vector<1x1x32xf32>
    %9 = vector.broadcast %7 : vector<2x16x1xf32> to vector<2x16x32xf32>
    %10 = vector.broadcast %8 : vector<1x1x32xf32> to vector<2x16x32xf32>
    %11 = arith.mulf %9, %10 : vector<2x16x32xf32>
    %12 = vector.broadcast %4 : vector<1x1x32xf32> to vector<2x16x32xf32>
    %13 = arith.addf %12, %11 : vector<2x16x32xf32>
    %c0_6 = arith.constant 0 : index
    %c0_7 = arith.constant 0 : index
    %c0_8 = arith.constant 0 : index
    %14 = vector.load %arg2[%c0_6, %c0_7, %c0_8] : memref<2x16x32xf32, #tpu.memory_space<vmem>>, vector<2x16x32xf32>
    %15 = arith.mulf %14, %13 : vector<2x16x32xf32>
    "tpu.trace_start"() <{level = 10 : i32, message = "bnm,bme->bne"}> : () -> ()
    %cst = arith.constant dense<0.000000e+00> : vector<2x16x32xf32>
    %16 = tpu.matmul %0, %15, %cst {dimension_numbers = #tpu.dot_dimension_numbers<[2], [1], [1], [2], [0, 0, 0, 1, 1, 2], [0], [0]>} : vector<2x16x16xf32>, vector<2x16x32xf32>, vector<2x16x32xf32> -> vector<2x16x32xf32>
    "tpu.trace_stop"() : () -> ()
    %17 = vector.shape_cast %16 : vector<2x16x32xf32> to vector<32x32xf32>
    %c0_9 = arith.constant 0 : index
    %c0_10 = arith.constant 0 : index
    %18 = vector.load %arg5[%c0_9, %c0_10] : memref<32x32xf32, #tpu.memory_space<vmem>>, vector<32x32xf32>
    %cst_11 = arith.constant dense<0.000000e+00> : vector<32x32xf32>
    %19 = tpu.matmul %17, %18, %cst_11 {dimension_numbers = #tpu.dot_dimension_numbers<[1], [0], [0], [1], [0, 0, 1, 1], [], []>} : vector<32x32xf32>, vector<32x32xf32>, vector<32x32xf32> -> vector<32x32xf32>
    %20 = vector.shape_cast %19 : vector<32x32xf32> to vector<2x16x32xf32>
    %c0_12 = arith.constant 0 : index
    %c0_13 = arith.constant 0 : index
    %21 = vector.load %arg6[%c0_12, %c0_13] : memref<1x32xf32, #tpu.memory_space<vmem>>, vector<1x32xf32>
    %22 = vector.shape_cast %21 : vector<1x32xf32> to vector<1x1x32xf32>
    %23 = vector.broadcast %22 : vector<1x1x32xf32> to vector<2x16x32xf32>
    %24 = arith.addf %20, %23 : vector<2x16x32xf32>
    %cst_14 = arith.constant 5.000000e-01 : f32
    %25 = vector.broadcast %cst_14 : f32 to vector<2x16x32xf32>
    %26 = arith.mulf %25, %24 : vector<2x16x32xf32>
    %cst_15 = arith.constant 0.707106769 : f32
    %27 = vector.broadcast %cst_15 : f32 to vector<2x16x32xf32>
    %28 = arith.mulf %24, %27 : vector<2x16x32xf32>
    %29 = math.erf %28 : vector<2x16x32xf32>
    %cst_16 = arith.constant 1.000000e+00 : f32
    %30 = vector.broadcast %cst_16 : f32 to vector<2x16x32xf32>
    %31 = arith.addf %30, %29 : vector<2x16x32xf32>
    %32 = arith.mulf %26, %31 : vector<2x16x32xf32>
    %cst_17 = arith.constant dense<0.000000e+00> : vector<2x16xf32>
    %33 = vector.multi_reduction <add>, %0, %cst_17 [1] : vector<2x16x16xf32> to vector<2x16xf32>
    %34 = vector.shape_cast %33 : vector<2x16xf32> to vector<2x16x1xf32>
    %35 = vector.broadcast %34 : vector<2x16x1xf32> to vector<2x16x32xf32>
    %36 = arith.mulf %35, %32 : vector<2x16x32xf32>
    %cst_18 = arith.constant dense<0.000000e+00> : vector<2x32xf32>
    %37 = vector.multi_reduction <add>, %36, %cst_18 [1] : vector<2x16x32xf32> to vector<2x32xf32>
    %c0_19 = arith.constant 0 : index
    %c0_20 = arith.constant 0 : index
    %38 = vector.load %arg7[%c0_19, %c0_20] : memref<32x32xf32, #tpu.memory_space<vmem>>, vector<32x32xf32>
    %cst_21 = arith.constant dense<0.000000e+00> : vector<2x32xf32>
    %39 = tpu.matmul %37, %38, %cst_21 {dimension_numbers = #tpu.dot_dimension_numbers<[1], [0], [0], [1], [0, 0, 1, 1], [], []>} : vector<2x32xf32>, vector<32x32xf32>, vector<2x32xf32> -> vector<2x32xf32>
    %c0_22 = arith.constant 0 : index
    %c0_23 = arith.constant 0 : index
    %40 = vector.load %arg8[%c0_22, %c0_23] : memref<1x32xf32, #tpu.memory_space<vmem>>, vector<1x32xf32>
    %cst_24 = arith.constant 1.600000e+01 : f32
    %41 = vector.broadcast %cst_24 : f32 to vector<1x32xf32>
    %42 = arith.mulf %41, %40 : vector<1x32xf32>
    %43 = vector.broadcast %42 : vector<1x32xf32> to vector<2x32xf32>
    %44 = arith.addf %39, %43 : vector<2x32xf32>
    %c0_25 = arith.constant 0 : index
    %c0_26 = arith.constant 0 : index
    %45 = vector.load %arg9[%c0_25, %c0_26] : memref<2x32xf32, #tpu.memory_space<vmem>>, vector<2x32xf32>
    tpu.vector_store %arg9[%c0_25, %c0_26], %44 {strides = array<i32>} : memref<2x32xf32, #tpu.memory_space<vmem>>, vector<2x32xf32>,
    return
  }
  func.func @transform_0(%arg0: i32) -> (i32, i32) {
    %c0_i32 = arith.constant 0 : i32
    %c0_i32_0 = arith.constant 0 : i32
    return %arg0, %c0_i32 : i32, i32
  }
  func.func @transform_1(%arg0: i32) -> (i32, i32, i32) {
    %c0_i32 = arith.constant 0 : i32
    %c0_i32_0 = arith.constant 0 : i32
    %c0_i32_1 = arith.constant 0 : i32
    return %arg0, %c0_i32, %c0_i32_0 : i32, i32, i32
  }
  func.func @transform_2(%arg0: i32) -> (i32, i32, i32) {
    %c0_i32 = arith.constant 0 : i32
    %c0_i32_0 = arith.constant 0 : i32
    %c0_i32_1 = arith.constant 0 : i32
    return %arg0, %c0_i32, %c0_i32_0 : i32, i32, i32
  }
  func.func @transform_3(%arg0: i32) -> (i32, i32) {
    %c0_i32 = arith.constant 0 : i32
    %c0_i32_0 = arith.constant 0 : i32
    %c0_i32_1 = arith.constant 0 : i32
    return %c0_i32, %c0_i32_0 : i32, i32
  }
  func.func @transform_4(%arg0: i32) -> (i32, i32) {
    %c0_i32 = arith.constant 0 : i32
    %c0_i32_0 = arith.constant 0 : i32
    %c0_i32_1 = arith.constant 0 : i32
    return %c0_i32, %c0_i32_0 : i32, i32
  }
  func.func @transform_5(%arg0: i32) -> (i32, i32) {
    %c0_i32 = arith.constant 0 : i32
    %c0_i32_0 = arith.constant 0 : i32
    %c0_i32_1 = arith.constant 0 : i32
    return %c0_i32, %c0_i32_0 : i32, i32
  }
  func.func @transform_6(%arg0: i32) -> (i32, i32) {
    %c0_i32 = arith.constant 0 : i32
    %c0_i32_0 = arith.constant 0 : i32
    %c0_i32_1 = arith.constant 0 : i32
    return %c0_i32, %c0_i32_0 : i32, i32
  }
  func.func @transform_7(%arg0: i32) -> (i32, i32) {
    %c0_i32 = arith.constant 0 : i32
    %c0_i32_0 = arith.constant 0 : i32
    %c0_i32_1 = arith.constant 0 : i32
    return %c0_i32, %c0_i32_0 : i32, i32
  }
  func.func @transform_8(%arg0: i32) -> (i32, i32) {
    %c0_i32 = arith.constant 0 : i32
    %c0_i32_0 = arith.constant 0 : i32
    return %arg0, %c0_i32 : i32, i32
  }
}

</mosaic_0001>

<bundles_post_ra>
// kernel: tpu_custom_call.1
= control target key start
LH: loop header
LB: loop body
LE: loop exit
PB: predicated region body
PF: predicated region fallthrough
CT: control target
= control target key end

     0   :  { %13 = vsyncpa [#allocation3], 0  ;;  %s941_s0 = inlined_call_operand.hbm [shape: f32[2,16], index: 0, kind: input, shape index: {}]   ;;  %s942_s1 = inlined_call_operand.hbm [shape: f32[2,16,32], index: 1, kind: input, shape index: {}]   ;;  %s943_s2 = inlined_call_operand.hbm [shape: f32[2,16,16], index: 2, kind: input, shape index: {}]   ;;  %s944_s3 = inlined_call_operand.vmem [shape: f32[2,32], index: 3, kind: input, shape index: {}]   ;;  %s945_s4 = inlined_call_operand.hbm [shape: f32[32,32], index: 4, kind: input, shape index: {}]   ;;  %s946_s5 = inlined_call_operand.vmem [shape: f32[1,32], index: 5, kind: input, shape index: {}]   ;;  %s947_s6 = inlined_call_operand.hbm [shape: f32[32,32], index: 6, kind: input, shape index: {}]   ;;  %s948_s7 = inlined_call_operand.vmem [shape: f32[1,32], index: 7, kind: input, shape index: {}]   ;;  %s949_s8 = inlined_call_operand.hbm [shape: f32[2,32], index: 8, kind: output, shape index: {}]  }
   0x1   :  { %14 = vsyncpa [#allocation6], 0 }
   0x2   :  { %15 = vsyncpa [#allocation9], 0 }
   0x3   :  { %16 = vsyncpa [#allocation4], 0  ;;  %s825_s27 = smov [#allocation5]  }
   0x4   :  { %s32_s28 = sshll.u32 %s825_s27, 4  ;;  %s33_s28 = int_to_ptr.vmem [resolvable:$true] %s32_s28 }
   0x5   :  { %s705_s29 = scalar_lea.vmem %s33_s28, 512  ;;  %p710_p1 = scmp.lt.s32.totalorder %s33_s28, %s33_s28 }
   0x6   :  { %p706_p0 = scmp.ne.s32.totalorder %s33_s28, %s705_s29  ;;  %p711_p2 = scmp.lt.s32.totalorder %s705_s29, %s705_s29 }
   0x8   :  { %p712_p3 = por %p711_p2, %p710_p1 }
   0xa   :  { %p713_p4 = pnand %p712_p3, %p706_p0 }
   0xc   :  { %716 = shalt.err (!%p713_p4)
}
   0xd   :  { %s826_s30 = smov 128   ;;  %s827_s9 = smov 8  }
   0xe   :  { %38 = dma.hbm_to_vmem [thread:$0]  %s942_s1, 512, %s33_s28, [#allocation6], %s826_s30, %s826_s30, %s827_s9  }
   0xf   :  { %s828_s12 = smov [#allocation8]   ;;  %s829_s14 = smov [#allocation2]  }
  0x10   :  { %s58_s13 = sshll.u32 %s828_s12, 4  ;;  %s23_s15 = sshll.u32 %s829_s14, 4  ;;  %s59_s13 = int_to_ptr.vmem [resolvable:$true] %s58_s13  ;;  %s24_s15 = int_to_ptr.vmem [resolvable:$true] %s23_s15 }
  0x11   :  { %s725_s16 = scalar_lea.vmem %s59_s13, 512  ;;  %p730_p6 = scmp.lt.s32.totalorder %s59_s13, %s59_s13 }
  0x12   :  { %p726_p5 = scmp.ne.s32.totalorder %s59_s13, %s725_s16  ;;  %p731_p7 = scmp.lt.s32.totalorder %s725_s16, %s725_s16 }
  0x14   :  { %p732_p8 = por %p731_p7, %p730_p6 }
  0x16   :  { %p733_p9 = pnand %p732_p8, %p726_p5 }
  0x18   :  { %736 = shalt.err (!%p733_p9)
}
  0x19   :  { %64 = dma.hbm_to_vmem [thread:$0]  %s945_s4, 512, %s59_s13, [#allocation9], %s826_s30, %s826_s30, %s827_s9  }
  0x1a   :  { %s745_s1 = scalar_lea.vmem %s24_s15, 32  ;;  %p750_p11 = scmp.lt.s32.totalorder %s24_s15, %s24_s15 }
  0x1b   :  { %p746_p10 = scmp.ne.s32.totalorder %s24_s15, %s745_s1  ;;  %p751_p12 = scmp.lt.s32.totalorder %s745_s1, %s745_s1 }
  0x1d   :  { %p752_p13 = por %p751_p12, %p750_p11 }
  0x1f   :  { %p753_p0 = pnand %p752_p13, %p746_p10 }
  0x21   :  { %756 = shalt.err (!%p753_p0)
}
  0x22   :  { %26 = dma.hbm_to_vmem [thread:$0]  %s941_s0, 32, %s24_s15, [#allocation3]  }
  0x23   :  { %s830_s21 = smov [#allocation7]   ;;  %s831_s23 = smov [#allocation10]  }
  0x24   :  { %s44_s22 = sshll.u32 %s830_s21, 4  ;;  %s72_s24 = sshll.u32 %s831_s23, 4  ;;  %s45_s22 = int_to_ptr.vmem [resolvable:$true] %s44_s22  ;;  %s73_s24 = int_to_ptr.vmem [resolvable:$true] %s72_s24 }
  0x25   :  { %s765_s25 = scalar_lea.vmem %s45_s22, 512  ;;  %p770_p2 = scmp.lt.s32.totalorder %s45_s22, %s45_s22 }
  0x26   :  { %p766_p1 = scmp.ne.s32.totalorder %s45_s22, %s765_s25  ;;  %p771_p3 = scmp.lt.s32.totalorder %s765_s25, %s765_s25 }
  0x28   :  { %p772_p4 = por %p771_p3, %p770_p2 }
  0x2a   :  { %p773_p5 = pnand %p772_p4, %p766_p1 }
  0x2c   :  { %776 = shalt.err (!%p773_p5)
}
  0x2d   :  { %50 = dma.hbm_to_vmem [thread:$0]  %s943_s2, 512, %s45_s22, [#allocation6], %s826_s30, %s826_s30, %s827_s9  }
  0x2e   :  { %s785_s0 = scalar_lea.vmem %s73_s24, 512  ;;  %p790_p7 = scmp.lt.s32.totalorder %s73_s24, %s73_s24 }
  0x2f   :  { %p786_p6 = scmp.ne.s32.totalorder %s73_s24, %s785_s0  ;;  %p791_p8 = scmp.lt.s32.totalorder %s785_s0, %s785_s0 }
  0x31   :  { %p792_p9 = por %p791_p8, %p790_p7 }
  0x33   :  { %p793_p10 = pnand %p792_p9, %p786_p6 }
  0x35   :  { %796 = shalt.err (!%p793_p10)
}
  0x36   :  { %78 = dma.hbm_to_vmem [thread:$0]  %s947_s6, 512, %s73_s24, [#allocation9], %s826_s30, %s826_s30, %s827_s9  }
  0x37   :  { %817 = dma.done.wait [#allocation3], 32  }
  0x38   :  { %818 = vsyncadd [#allocation3], 4294967264 }
  0x39   :  { %819 = dma.done.wait [#allocation6], 1024  }
  0x3a   :  { %820 = vsyncadd [#allocation6], 4294966272 }
  0x3b   :  { %821 = dma.done.wait [#allocation9], 1024  }
  0x3c   :  { %822 = vsyncadd [#allocation9], 4294966272  ;;  %v102_v0 = vlaneseq  ;;  %v100_v4 = vld [vmem:[#allocation2] sm:$0x3]  ;;  %vm152_vm0 = vcmask 130048   ;;  %v96_v7 = vld [vmem:[#allocation7] sm:$0xff] }
  0x3d   :  { %644 = vmatprep.mubr.msk.f32.mxu0 %vm152_vm0, %v96_v7  ;;  %v98_v8 = vld [vmem:[#allocation7 + $0x10] sm:$0xff]  ;;  %v101_v9 = vld [vmem:[%s944_s3] sm:$0x3]  ;;  %v145_v18 = vld [vmem:[#allocation5 + $0x8] sm:$0xff]  ;;  %v448_v38 = vsel %vm152_vm0, %v96_v7, 0.0  ;;  %vm319_vm1 = vcmask 261120  }
  0x3e   :  { %v103_v1 = vshrl.u32 %v102_v0, 7  ;;  %651 = vmatprep.mubr.msk.f32.mxu1 %vm152_vm0, %v98_v8  ;;  %v125_v10 = vrot.slane %v101_v9, 7  ;;  %v147_v19 = vld [vmem:[#allocation5 + $0x18] sm:$0xff]  ;;  %v144_v28 = vld [vmem:[#allocation5] sm:$0xff]  ;;  %v146_v29 = vld [vmem:[#allocation5 + $0x10] sm:$0xff]  ;;  %v457_v40 = vsel %vm152_vm0, %v98_v8, 0.0 }
  0x3f   :  { %v97_v34 = vld [vmem:[#allocation7 + $0x8] sm:$0xff]  ;;  %v99_v35 = vld [vmem:[#allocation7 + $0x18] sm:$0xff]  ;;  %v317_v37 = vld [vmem:[#allocation8 + $0x10] sm:$0xff]  ;;  %v832_v62 = vmov 0.0   ;;  %vm833_vm2 = vmmov 0   ;;  %vm516_vm3 = vcmask 1041409  }
  0x40   :  { %v907_v2 = vsub.s32 0, %v103_v1  ;;  %v115_v3 = vsub.s32 1, %v103_v1  ;;  %v127_v11 = vsub.f32 %v101_v9, %v125_v10  ;;  %v318_v36 = vld [vmem:[#allocation8 + $0x18] sm:$0xff]  ;;  %v449_v39 = vsel %vm152_vm0, %v97_v34, 0.0  ;;  %v316_v44 = vld [vmem:[#allocation8 + $0x8] sm:$0xff]  ;;  %v315_v47 = vld [vmem:[#allocation8] sm:$0xff] }
  0x41   :  { %v458_v41 = vsel %vm152_vm0, %v99_v35, 0.0  ;;  %v450_v42 = vadd.f32 %v449_v39, %v448_v38  ;;  %v505_v63 = vld [vmem:[#allocation10 + $0x18] sm:$0xff]  ;;  %v504_v0 = vld [vmem:[#allocation10 + $0x10] sm:$0xff]  ;;  %v503_v1 = vld [vmem:[#allocation10 + $0x8] sm:$0xff]  ;;  %s834_s9 = smov [#allocation11]   ;;  %vm590_vm4 = vcmask 254976  }
  0x42   :  { %v105_v5 = vrot.slane %v100_v4, %v907_v2  ;;  %v116_v6 = vrot.slane %v100_v4, %v115_v3  ;;  %v131_v12 = vrot.slane %v127_v11, %v115_v3  ;;  %v139_v13 = vrot.slane %v101_v9, %v907_v2  ;;  %v502_v3 = vld [vmem:[#allocation10] sm:$0xff]  ;;  %v617_v4 = vld [vmem:[%s946_s5] ss:$0 sm:$0xff]  ;;  %s598_s10 = sshll.u32 %s834_s9, 4  ;;  %s599_s10 = int_to_ptr.vmem [resolvable:$true] %s598_s10 }
  0x43   :  { %v459_v43 = vadd.f32 %v458_v41, %v457_v40  ;;  %v451_v45 = vrot.slane %v450_v42, 4  ;;  %s797_s11 = scalar_lea.vmem %s599_s10, 32  ;;  %p802_p12 = scmp.lt.s32.totalorder %s599_s10, %s599_s10 }
  0x44   :  { %111 = vbcast.lane.b32.xlu0 %v105_v5, 264  ;;  %122 = vbcast.lane.b32.xlu1 %v116_v6, 264  ;;  %p798_p11 = scmp.ne.s32.totalorder %s599_s10, %s797_s11  ;;  %p803_p13 = scmp.lt.s32.totalorder %s797_s11, %s797_s11 }
  0x45   :  { %v460_v46 = vrot.slane %v459_v43, 4  ;;  %v452_v48 = vadd.f32 %v451_v45, %v450_v42 }
  0x46   :  { %p804_p0 = por %p803_p13, %p802_p12 }
  0x47   :  { %v461_v49 = vadd.f32 %v460_v46, %v459_v43  ;;  %v453_v50 = vrot.slane %v452_v48, 2 }
  0x48   :  { %107 = vbcast.lane.b32.xlu0 %v105_v5, 256  ;;  %118 = vbcast.lane.b32.xlu1 %v116_v6, 256  ;;  %p805_p1 = pnand %p804_p0, %p798_p11 }
  0x49   :  { %v462_v51 = vrot.slane %v461_v49, 2  ;;  %v454_v52 = vadd.f32 %v453_v50, %v452_v48 }
  0x4b   :  { %v463_v53 = vadd.f32 %v462_v51, %v461_v49  ;;  %v455_v54 = vrot.slane %v454_v52, 1 }
  0x4d   :  { %v464_v55 = vrot.slane %v463_v53, 1  ;;  %v456_v56 = vadd.f32 %v455_v54, %v454_v52 }
  0x4f   :  { %471 = vbcast.lane.b32.xlu1 %v456_v56, 264  ;;  %467 = vbcast.lane.b32.xlu0 %v456_v56, 256  ;;  %v465_v57 = vadd.f32 %v464_v55, %v463_v53 }
  0x53   :  { %478 = vbcast.lane.b32.xlu1 %v465_v57, 264  ;;  %474 = vbcast.lane.b32.xlu0 %v465_v57, 256 }
  0xb6   :  { %v112_v14 = vpop.permute.xlu0 %111  ;;  %v123_v15 = vpop.permute.xlu1 %122 }
  0xb7   :  { %v133_v16 = vmul.f32 %v131_v12, %v112_v14  ;;  %v135_v17 = vmul.f32 %v131_v12, %v123_v15 }
  0xb9   :  { %v141_v20 = vadd.f32 %v139_v13, %v133_v16  ;;  %v143_v21 = vadd.f32 %v139_v13, %v135_v17 }
  0xba   :  { %v108_v22 = vpop.permute.xlu0 %107  ;;  %v119_v23 = vpop.permute.xlu1 %118 }
  0xbb   :  { %v132_v24 = vmul.f32 %v131_v12, %v108_v22  ;;  %v134_v25 = vmul.f32 %v131_v12, %v119_v23  ;;  %v149_v26 = vmul.f32 %v145_v18, %v141_v20  ;;  %v151_v27 = vmul.f32 %v147_v19, %v143_v21 }
  0xbd   :  { %v140_v30 = vadd.f32 %v139_v13, %v132_v24  ;;  %v142_v31 = vadd.f32 %v139_v13, %v134_v25  ;;  %640 = vmatprep.subr.mxu0 %v149_v26  ;;  %647 = vmatprep.subr.mxu1 %v151_v27 }
  0xbe   :  { %641 = vmatpush3.msra.mxu0 %v149_v26  ;;  %648 = vmatpush3.msra.mxu1 %v151_v27 }
  0xbf   :  { %v148_v32 = vmul.f32 %v144_v28, %v140_v30  ;;  %v150_v33 = vmul.f32 %v146_v29, %v142_v31 }
  0xc1   :  { %642 = vmatprep.subr.mxu0 %v148_v32  ;;  %649 = vmatprep.subr.mxu1 %v150_v33  ;;  %v472_v18 = vpop.permute.xlu1 %471  ;;  %v468_v22 = vpop.permute.xlu0 %467 }
  0xc2   :  { %643 = vmatpush3.msra.mxu0 %v148_v32  ;;  %650 = vmatpush3.msra.mxu1 %v150_v33 }
  0xc3   :  { %645 = vmatmul.mubr.msk.f32.vlgmr.msra.gmra.mxu0 %vm152_vm0, %v97_v34  ;;  %652 = vmatmul.mubr.msk.f32.vlgmr.msra.gmra.mxu1 %vm152_vm0, %v99_v35 }
  0xc4   :  { %654 = vmatprep.subr.mxu0 %v318_v36  ;;  %668 = vmatprep.subr.mxu1 %v832_v62 }
  0xc5   :  { %655 = vmatpush3.msra.mxu0 %v318_v36  ;;  %669 = vmatpush3.msra.mxu1 %v505_v63  ;;  %v479_v32 = vpop.permute.xlu1 %478 }
  0xc6   :  { %656 = vmatprep.subr.mxu0 %v317_v37  ;;  %670 = vmatprep.subr.mxu1 %v832_v62 }
  0xc7   :  { %657 = vmatpush3.msra.mxu0 %v317_v37  ;;  %671 = vmatpush3.msra.mxu1 %v504_v0  ;;  %v475_v37 = vpop.permute.xlu0 %474 }
  0xc8   :  { %658 = vmatprep.subr.mxu0 %v316_v44  ;;  %672 = vmatprep.subr.mxu1 %v832_v62 }
  0xc9   :  { %659 = vmatpush3.msra.mxu0 %v316_v44  ;;  %673 = vmatpush3.msra.mxu1 %v503_v1 }
  0xca   :  { %660 = vmatprep.subr.mxu0 %v315_v47  ;;  %674 = vmatprep.subr.mxu1 %v832_v62 }
  0xcb   :  { %661 = vmatpush3.msra.mxu0 %v315_v47  ;;  %676 = vmatprep.mubr.msk.f32.mxu1 %vm833_vm2, %v832_v62 }
  0xcc   :  { %675 = vmatpush3.msra.mxu1 %v502_v3 }
 0x183   :  { %v646_v58 = vpop.f32.mrf.mxu0  ;;  %v653_v59 = vpop.f32.mrf.mxu1 }
 0x185   :  { %v225_v60 = vpop.f32.mrf.mxu0  ;;  %v306_v61 = vpop.f32.mrf.mxu1 }
 0x186   :  { %662 = vmatprep.mubr.msk.f32.mxu0 %vm319_vm1, %v225_v60  ;;  %v506_v60 = vld [vmem:[%s948_s7] sm:$0x1] }
 0x187   :  { %663 = vmatmul.mubr.msk.f32.vlgmr.msra.gmra.mxu0 %vm319_vm1, %v646_v58 }
 0x188   :  { %665 = vmatprep.mubr.msk.f32.mxu0 %vm319_vm1, %v306_v61  ;;  %v507_v61 = vmul.f32 16.0, %v506_v60 }
 0x18a   :  { %v512_v62 = vrot.slane %v507_v61, %v907_v2 }
 0x18b   :  { %666 = vmatmul.mubr.msk.f32.gmra.mxu0 %vm319_vm1, %v653_v59 }
 0x247   :  { %v664_v5 = vpop.f32.mrf.mxu0 }
 0x248   :  { %v425_v6 = vadd.f32 %v664_v5, %v617_v4 }
 0x249   :  { %v398_v7 = vpop.f32.mrf.mxu0 }
 0x24a   :  { %v433_v8 = vmul.f32 0.70710677, %v425_v6  ;;  %v424_v9 = vadd.f32 %v617_v4, %v398_v7  ;;  %v429_v19 = vmul.f32 0.5, %v425_v6 }
 0x24b   :  { %v667_v10 = vpop.f32.mrf.mxu0 }
 0x24c   :  { %689 = verf.f32 %v433_v8  ;;  %v432_v11 = vmul.f32 0.70710677, %v424_v9  ;;  %v427_v12 = vadd.f32 %v667_v10, %v617_v4  ;;  %v428_v23 = vmul.f32 0.5, %v424_v9 }
 0x24d   :  { %v408_v13 = vpop.f32.mrf.mxu0 }
 0x24e   :  { %691 = verf.f32 %v432_v11  ;;  %v435_v14 = vmul.f32 0.70710677, %v427_v12  ;;  %v426_v15 = vadd.f32 %v617_v4, %v408_v13  ;;  %v431_v27 = vmul.f32 0.5, %v427_v12 }
 0x250   :  { %693 = verf.f32 %v435_v14  ;;  %v434_v16 = vmul.f32 0.70710677, %v426_v15  ;;  %v430_v33 = vmul.f32 0.5, %v426_v15 }
 0x252   :  { %695 = verf.f32 %v434_v16 }
 0x259   :  { %v690_v17 = vpop.eup %689 }
 0x25a   :  { %v441_v20 = vadd.f32 1.0, %v690_v17 }
 0x25b   :  { %v692_v21 = vpop.eup %691 }
 0x25c   :  { %v445_v24 = vmul.f32 %v441_v20, %v429_v19  ;;  %v440_v25 = vadd.f32 1.0, %v692_v21 }
 0x25d   :  { %v694_v26 = vpop.eup %693 }
 0x25e   :  { %v481_v28 = vmul.f32 %v472_v18, %v445_v24  ;;  %v444_v29 = vmul.f32 %v440_v25, %v428_v23  ;;  %v443_v30 = vadd.f32 1.0, %v694_v26 }
 0x25f   :  { %v696_v31 = vpop.eup %695 }
 0x260   :  { %v480_v34 = vmul.f32 %v468_v22, %v444_v29  ;;  %v447_v35 = vmul.f32 %v443_v30, %v431_v27  ;;  %v442_v36 = vadd.f32 1.0, %v696_v31  ;;  %v485_v38 = vsel %vm319_vm1, %v481_v28, 0.0 }
 0x262   :  { %v484_v39 = vsel %vm319_vm1, %v480_v34, 0.0  ;;  %v483_v40 = vmul.f32 %v479_v32, %v447_v35  ;;  %v446_v41 = vmul.f32 %v442_v36, %v430_v33 }
 0x263   :  { %v486_v42 = vadd.f32 %v485_v38, %v484_v39 }
 0x264   :  { %v482_v43 = vmul.f32 %v475_v37, %v446_v41  ;;  %v494_v45 = vsel %vm319_vm1, %v483_v40, 0.0 }
 0x265   :  { %v487_v44 = vrot.slane %v486_v42, 4 }
 0x266   :  { %v493_v46 = vsel %vm319_vm1, %v482_v43, 0.0 }
 0x267   :  { %v488_v47 = vadd.f32 %v487_v44, %v486_v42  ;;  %v495_v48 = vadd.f32 %v494_v45, %v493_v46 }
 0x269   :  { %v489_v49 = vrot.slane %v488_v47, 2  ;;  %v496_v50 = vrot.slane %v495_v48, 4 }
 0x26b   :  { %v490_v51 = vadd.f32 %v489_v49, %v488_v47  ;;  %v497_v52 = vadd.f32 %v496_v50, %v495_v48 }
 0x26d   :  { %v498_v53 = vrot.slane %v497_v52, 2  ;;  %v491_v54 = vrot.slane %v490_v51, 1 }
 0x26f   :  { %v499_v55 = vadd.f32 %v498_v53, %v497_v52  ;;  %v492_v57 = vadd.f32 %v491_v54, %v490_v51 }
 0x271   :  { %v500_v56 = vrot.slane %v499_v55, 1 }
 0x273   :  { %v501_v58 = vadd.f32 %v500_v56, %v499_v55 }
 0x275   :  { %v517_v59 = vsel %vm516_vm3, %v501_v58, %v492_v57 }
 0x276   :  { %677 = vmatmul.mubr.msk.f32.vlgmr.msra.gmra.mxu1 %vm319_vm1, %v517_v59 }
 0x336   :  { %v586_v63 = vpop.f32.mrf.mxu1 }
 0x337   :  { %v587_v0 = vadd.f32 %v586_v63, %v512_v62 }
 0x338   :  { %v678_v1 = vpop.f32.mrf.mxu1 }
 0x339   :  { %591 = vst.msk [vmem:[#allocation11] sm:$0x3] %vm590_vm4, %v587_v0 }
 0x33a   :  { %808 = shalt.err (!%p805_p1)
}
 0x33b   :  { %601 = dma.vmem_to_hbm [thread:$0]  %s599_s10, 32, %s949_s8, [#allocation4]  }
 0x33c   :  { %823 = dma.done.wait [#allocation4], 32  }
 0x33d   :  { %824 = vsyncadd [#allocation4], 4294967264 }
 0x33e   :  { %605 = vsyncpa [#allocation3], 1 }
 0x33f   :  { %606 = vsyncpa [#allocation6], 1 }
 0x340   :  { %607 = vsyncpa [#allocation9], 1 }
 0x341   :  { %608 = vsyncpa [#allocation4], 1 }

</bundles_post_ra>
